<compile_context>
chip_gen: v5e
topology: v5e:2x2
jax: 0.10.0
libtpu: 0.0.40
codegen_flags: <defaults>
</compile_context>

<pallas_src>
import jax
import jax.numpy as jnp
from jax.experimental import pallas as pl
from jax.experimental.pallas import tpu as pltpu

IN_DIM = 1
HID_DIM = 200
OUT_DIM = 784

HID_PAD = 256   # 2 x 128 lanes -> clean MXU contraction depth


def _sigmoid(x):
    # Single EUP transcendental (tanh); the mul/add are free VPU filler.
    return 0.5 * jnp.tanh(0.5 * x) + 0.5


def _mlp_kernel(x_ref, w1_ref, b1_ref, w2_ref, b2_ref, o_ref):
    # Layer 1: Linear(1 -> 256 padded) + Sigmoid.  K == 1, so this is an outer
    # product: VPU broadcast multiply instead of an MXU matmul.
    h = _sigmoid(x_ref[...] * w1_ref[...] + b1_ref[...])          # (TILE_B, 256) f32
    # Layer 2: Linear(256 -> 784) on the MXU, bf16 operands, f32 accumulation.
    y = jnp.dot(h.astype(jnp.bfloat16), w2_ref[...],
                preferred_element_type=jnp.float32)               # (TILE_B, 784) f32
    o_ref[...] = _sigmoid(y + b2_ref[...]).astype(o_ref.dtype)


def _round_up(n, m):
    return ((n + m - 1) // m) * m


@jax.jit
def generator_forward(x, w1, b1, w2, b2):
    """x: (B, 1) f32 -> (B, 784) f32, fused 2-layer sigmoid MLP on TPU."""
    B = x.shape[0]

    # ---- parameter prep (padding + bf16 cast) on tiny arrays -------------------
    # Padded w1/b1 columns are zero -> padded h columns are sigmoid(0) = 0.5,
    # harmless because the matching (padded) rows of w2 are exactly zero.
    w1p = jnp.zeros((1, HID_PAD), jnp.float32).at[:, :HID_DIM].set(
        w1.reshape(1, HID_DIM))
    b1p = jnp.zeros((1, HID_PAD), jnp.float32).at[:, :HID_DIM].set(
        b1.reshape(1, HID_DIM))
    w2p = jnp.zeros((HID_PAD, OUT_DIM), jnp.float32).at[:HID_DIM, :].set(
        w2).astype(jnp.bfloat16)
    b2p = b2.reshape(1, OUT_DIM).astype(jnp.float32)

    # ---- batch tiling -----------------------------------------------------------
    # Up to 1024 rows per step (amortizes per-step overhead; VMEM stays well under
    # the 32 MiB default scoped limit), but keep >= 2 grid steps when B is large
    # enough so both v7x TensorCores get work via the "parallel" axis.
    half = -(-B // 2)
    tile_b = min(1024, _round_up(max(half, 1), 8))
    b_pad = _round_up(B, tile_b)
    xp = x
    if b_pad != B:
        xp = jnp.zeros((b_pad, IN_DIM), x.dtype).at[:B].set(x)

    grid = (b_pad // tile_b,)

    cost = pl.CostEstimate(
        flops=2 * b_pad * HID_PAD * OUT_DIM + 3 * b_pad * HID_PAD,
        transcendentals=b_pad * (HID_PAD + OUT_DIM),
        bytes_accessed=(xp.size * 4 + w1p.size * 4 + b1p.size * 4
                        + w2p.size * 2 + b2p.size * 4 + b_pad * OUT_DIM * 4),
    )

    out = pl.pallas_call(
        _mlp_kernel,
        out_shape=jax.ShapeDtypeStruct((b_pad, OUT_DIM), jnp.float32),
        grid=grid,
        in_specs=[
            pl.BlockSpec((tile_b, IN_DIM), lambda i: (i, 0)),     # x tile (pipelined)
            pl.BlockSpec((1, HID_PAD), lambda i: (0, 0)),         # w1 (VMEM-resident)
            pl.BlockSpec((1, HID_PAD), lambda i: (0, 0)),         # b1 (VMEM-resident)
            pl.BlockSpec((HID_PAD, OUT_DIM), lambda i: (0, 0)),   # w2 (VMEM-resident)
            pl.BlockSpec((1, OUT_DIM), lambda i: (0, 0)),         # b2 (VMEM-resident)
        ],
        out_specs=pl.BlockSpec((tile_b, OUT_DIM), lambda i: (i, 0)),
        compiler_params=pltpu.CompilerParams(
            dimension_semantics=("parallel",)),
        cost_estimate=cost,
    )(xp, w1p, b1p, w2p, b2p)

    return out if b_pad == B else out[:B]


def init_params(key):
    """Deterministic init mimicking torch.nn.Linear default (U[-1/sqrt(fan_in), +])."""
    k1, k2, k3, k4 = jax.random.split(key, 4)
    bound1 = 1.0 / jnp.sqrt(jnp.float32(IN_DIM))
    bound2 = 1.0 / jnp.sqrt(jnp.float32(HID_DIM))
    # stored as (in, out) so the kernel computes x @ W
    w1 = jax.random.uniform(k1, (IN_DIM, HID_DIM), jnp.float32, -bound1, bound1)
    b1 = jax.random.uniform(k2, (1, HID_DIM), jnp.float32, -bound1, bound1)
    w2 = jax.random.uniform(k3, (HID_DIM, OUT_DIM), jnp.float32, -bound2, bound2)
    b2 = jax.random.uniform(k4, (1, OUT_DIM), jnp.float32, -bound2, bound2)
    return w1, b1, w2, b2


def reference_forward(x, w1, b1, w2, b2):
    h = jax.nn.sigmoid(x @ w1 + b1)
    return jax.nn.sigmoid(h @ w2 + b2)


if __name__ == "__main__":
    key = jax.random.PRNGKey(0)
    kp, kx = jax.random.split(key)
    w1, b1, w2, b2 = init_params(kp)

    batch = 8
    x = jax.random.normal(kx, (batch, IN_DIM), jnp.float32)

    out = jax.block_until_ready(generator_forward(x, w1, b1, w2, b2))

    ref = reference_forward(x, w1, b1, w2, b2)
    assert out.shape == (batch, OUT_DIM), out.shape
    # bf16 MXU operands -> slightly loosened tolerance on sigmoid outputs
    # (tighter than before now that the approx-reciprocal sigmoid is gone).
    err = float(jnp.max(jnp.abs(out - ref)))
    assert err < 1e-2, f"mismatch vs reference: max abs err {err}"

    print("KERNEL_OK")
</pallas_src>

<mosaic_0001>
module attributes {stable_mosaic.version = 11 : i64} {
  func.func @_mlp_kernel(%arg0: i32, %arg1: memref<8x1xf32, #tpu.memory_space<vmem>>, %arg2: memref<1x256xf32, #tpu.memory_space<vmem>>, %arg3: memref<1x256xf32, #tpu.memory_space<vmem>>, %arg4: memref<256x784xbf16, #tpu.memory_space<vmem>>, %arg5: memref<1x784xf32, #tpu.memory_space<vmem>>, %arg6: memref<8x784xf32, #tpu.memory_space<vmem>>) attributes {dimension_semantics = [#tpu.dimension_semantics<parallel>], iteration_bounds = array<i64: 1>, scalar_prefetch = 0 : i64, scratch_operands = 0 : i64, tpu.core_type = #tpu.core_type<tc>, window_params = [{transform_indices = @transform_0, window_bounds = array<i64: 8, 1>}, {pipeline_mode = #tpu.pipeline_mode<synchronous>, transform_indices = @transform_1, window_bounds = array<i64: 1, 256>}, {pipeline_mode = #tpu.pipeline_mode<synchronous>, transform_indices = @transform_2, window_bounds = array<i64: 1, 256>}, {pipeline_mode = #tpu.pipeline_mode<synchronous>, transform_indices = @transform_3, window_bounds = array<i64: 256, 784>}, {pipeline_mode = #tpu.pipeline_mode<synchronous>, transform_indices = @transform_4, window_bounds = array<i64: 1, 784>}, {transform_indices = @transform_5, window_bounds = array<i64: 8, 784>}]} {
    %c0 = arith.constant 0 : index
    %c0_0 = arith.constant 0 : index
    %0 = vector.load %arg1[%c0, %c0_0] : memref<8x1xf32, #tpu.memory_space<vmem>>, vector<8x1xf32>
    %c0_1 = arith.constant 0 : index
    %c0_2 = arith.constant 0 : index
    %1 = vector.load %arg2[%c0_1, %c0_2] : memref<1x256xf32, #tpu.memory_space<vmem>>, vector<1x256xf32>
    %2 = vector.broadcast %0 : vector<8x1xf32> to vector<8x256xf32>
    %3 = vector.broadcast %1 : vector<1x256xf32> to vector<8x256xf32>
    %4 = arith.mulf %2, %3 : vector<8x256xf32>
    %c0_3 = arith.constant 0 : index
    %c0_4 = arith.constant 0 : index
    %5 = vector.load %arg3[%c0_3, %c0_4] : memref<1x256xf32, #tpu.memory_space<vmem>>, vector<1x256xf32>
    %6 = vector.broadcast %5 : vector<1x256xf32> to vector<8x256xf32>
    %7 = arith.addf %4, %6 : vector<8x256xf32>
    %cst = arith.constant 5.000000e-01 : f32
    %8 = vector.broadcast %cst : f32 to vector<8x256xf32>
    %9 = arith.mulf %8, %7 : vector<8x256xf32>
    %10 = math.tanh %9 : vector<8x256xf32>
    %cst_5 = arith.constant 5.000000e-01 : f32
    %11 = vector.broadcast %cst_5 : f32 to vector<8x256xf32>
    %12 = arith.mulf %11, %10 : vector<8x256xf32>
    %cst_6 = arith.constant 5.000000e-01 : f32
    %13 = vector.broadcast %cst_6 : f32 to vector<8x256xf32>
    %14 = arith.addf %12, %13 : vector<8x256xf32>
    %15 = arith.truncf %14 : vector<8x256xf32> to vector<8x256xbf16>
    %c0_7 = arith.constant 0 : index
    %c0_8 = arith.constant 0 : index
    %16 = vector.load %arg4[%c0_7, %c0_8] : memref<256x784xbf16, #tpu.memory_space<vmem>>, vector<256x784xbf16>
    %cst_9 = arith.constant dense<0.000000e+00> : vector<8x784xf32>
    %17 = tpu.matmul %15, %16, %cst_9 {dimension_numbers = #tpu.dot_dimension_numbers<[1], [0], [0], [1], [0, 0, 1, 1], [], []>} : vector<8x256xbf16>, vector<256x784xbf16>, vector<8x784xf32> -> vector<8x784xf32>
    %c0_10 = arith.constant 0 : index
    %c0_11 = arith.constant 0 : index
    %18 = vector.load %arg5[%c0_10, %c0_11] : memref<1x784xf32, #tpu.memory_space<vmem>>, vector<1x784xf32>
    %19 = vector.broadcast %18 : vector<1x784xf32> to vector<8x784xf32>
    %20 = arith.addf %17, %19 : vector<8x784xf32>
    %cst_12 = arith.constant 5.000000e-01 : f32
    %21 = vector.broadcast %cst_12 : f32 to vector<8x784xf32>
    %22 = arith.mulf %21, %20 : vector<8x784xf32>
    %23 = math.tanh %22 : vector<8x784xf32>
    %cst_13 = arith.constant 5.000000e-01 : f32
    %24 = vector.broadcast %cst_13 : f32 to vector<8x784xf32>
    %25 = arith.mulf %24, %23 : vector<8x784xf32>
    %cst_14 = arith.constant 5.000000e-01 : f32
    %26 = vector.broadcast %cst_14 : f32 to vector<8x784xf32>
    %27 = arith.addf %25, %26 : vector<8x784xf32>
    %c0_15 = arith.constant 0 : index
    %c0_16 = arith.constant 0 : index
    %28 = vector.load %arg6[%c0_15, %c0_16] : memref<8x784xf32, #tpu.memory_space<vmem>>, vector<8x784xf32>
    tpu.vector_store %arg6[%c0_15, %c0_16], %27 {strides = array<i32>} : memref<8x784xf32, #tpu.memory_space<vmem>>, vector<8x784xf32>,
    return
  }
  func.func @transform_0(%arg0: i32) -> (i32, i32) {
    %c0_i32 = arith.constant 0 : i32
    %c0_i32_0 = arith.constant 0 : i32
    return %arg0, %c0_i32 : i32, i32
  }
  func.func @transform_1(%arg0: i32) -> (i32, i32) {
    %c0_i32 = arith.constant 0 : i32
    %c0_i32_0 = arith.constant 0 : i32
    %c0_i32_1 = arith.constant 0 : i32
    return %c0_i32, %c0_i32_0 : i32, i32
  }
  func.func @transform_2(%arg0: i32) -> (i32, i32) {
    %c0_i32 = arith.constant 0 : i32
    %c0_i32_0 = arith.constant 0 : i32
    %c0_i32_1 = arith.constant 0 : i32
    return %c0_i32, %c0_i32_0 : i32, i32
  }
  func.func @transform_3(%arg0: i32) -> (i32, i32) {
    %c0_i32 = arith.constant 0 : i32
    %c0_i32_0 = arith.constant 0 : i32
    %c0_i32_1 = arith.constant 0 : i32
    return %c0_i32, %c0_i32_0 : i32, i32
  }
  func.func @transform_4(%arg0: i32) -> (i32, i32) {
    %c0_i32 = arith.constant 0 : i32
    %c0_i32_0 = arith.constant 0 : i32
    %c0_i32_1 = arith.constant 0 : i32
    return %c0_i32, %c0_i32_0 : i32, i32
  }
  func.func @transform_5(%arg0: i32) -> (i32, i32) {
    %c0_i32 = arith.constant 0 : i32
    %c0_i32_0 = arith.constant 0 : i32
    return %arg0, %c0_i32 : i32, i32
  }
}

</mosaic_0001>

<bundles_post_ra>
// kernel: generator_forward.1
= control target key start
LH: loop header
LB: loop body
LE: loop exit
PB: predicated region body
PF: predicated region fallthrough
CT: control target
= control target key end

     0   :  { %v1614_v3 = vmov 0   ;;  %s2360_s0 = inlined_call_operand.vmem [shape: f32[8,1], index: 0, kind: input, shape index: {}]   ;;  %s2361_s1 = inlined_call_operand.vmem [shape: f32[1,256], index: 1, kind: input, shape index: {}]   ;;  %s2362_s2 = inlined_call_operand.vmem [shape: f32[1,256], index: 2, kind: input, shape index: {}]   ;;  %s2363_s3 = inlined_call_operand.vmem [shape: bf16[256,784], index: 3, kind: input, shape index: {}]   ;;  %s2364_s4 = inlined_call_operand.vmem [shape: f32[1,784], index: 4, kind: input, shape index: {}]   ;;  %s2365_s5 = inlined_call_operand.hbm [shape: f32[8,784], index: 5, kind: output, shape index: {}]  }
   0x1   :  { %v21_v0 = vld [vmem:[%s2360_s0] sm:$0xff]  ;;  %v1205_v1 = vld [vmem:[%s2363_s3 + $0x188] sm:$0xf]  ;;  %1569 = vset.pattern.permute.xlu0 %v1614_v3  ;;  %v1504_v7 = vld [vmem:[%s2363_s3 + $0x18c] sm:$0xf] }
   0x2   :  { %v1507_v2 = vld [vmem:[%s2363_s3 + $0x1a0] sm:$0xf0]  ;;  %v1429_v5 = vld [vmem:[%s2363_s3 + $0x348] sm:$0xf]  ;;  %25 = vperm.xlu0 %1569, %v21_v0   ;;  %v1560_v10 = vld [vmem:[%s2363_s3 + $0x34c] sm:$0xf] }
   0x3   :  { %v1206_v4 = vor.u32 %v1507_v2, %v1205_v1  ;;  %v1563_v6 = vld [vmem:[%s2363_s3 + $0x360] sm:$0xf0]  ;;  %v1207_v9 = vld [vmem:[%s2363_s3 + $0x1a4] sm:$0xf0]  ;;  %v1177_v14 = vld [vmem:[%s2363_s3 + $0x150] sm:$0xf] }
   0x4   :  { %v1430_v8 = vor.u32 %v1563_v6, %v1429_v5  ;;  %v1431_v11 = vld [vmem:[%s2363_s3 + $0x364] sm:$0xf0]  ;;  %v1210_v12 = vor.u32 %v1504_v7, %v1207_v9  ;;  %v1500_v15 = vld [vmem:[%s2363_s3 + $0x168] sm:$0xf0]  ;;  %v1401_v16 = vld [vmem:[%s2363_s3 + $0x310] sm:$0xf] }
   0x5   :  { %773 = vmatpush.bf16.msra.mxu0 %v1206_v4  ;;  %v1434_v13 = vor.u32 %v1560_v10, %v1431_v11  ;;  %v1178_v17 = vor.u32 %v1500_v15, %v1177_v14  ;;  %v1556_v18 = vld [vmem:[%s2363_s3 + $0x328] sm:$0xf0]  ;;  %v1497_v19 = vld [vmem:[%s2363_s3 + $0x154] sm:$0xf]  ;;  %v1179_v20 = vld [vmem:[%s2363_s3 + $0x16c] sm:$0xf0] }
   0x6   :  { %786 = vmatpush.bf16.msra.mxu1 %v1430_v8  ;;  %799 = vmatpush.bf16.msra.mxu2 %v1210_v12  ;;  %v1402_v21 = vor.u32 %v1556_v18, %v1401_v16  ;;  %v1182_v22 = vor.u32 %v1497_v19, %v1179_v20  ;;  %v1553_v23 = vld [vmem:[%s2363_s3 + $0x314] sm:$0xf]  ;;  %v1403_v24 = vld [vmem:[%s2363_s3 + $0x32c] sm:$0xf0]  ;;  %v1149_v25 = vld [vmem:[%s2363_s3 + $0x118] sm:$0xf] }
   0x7   :  { %812 = vmatpush.bf16.msra.mxu3 %v1434_v13  ;;  %v1406_v26 = vor.u32 %v1553_v23, %v1403_v24  ;;  %v1493_v27 = vld [vmem:[%s2363_s3 + $0x130] sm:$0xf0]  ;;  %v1373_v28 = vld [vmem:[%s2363_s3 + $0x2d8] sm:$0xf]  ;;  %v1490_v31 = vld [vmem:[%s2363_s3 + $0x11c] sm:$0xf] }
   0x8   :  { %v1549_v29 = vld [vmem:[%s2363_s3 + $0x2f0] sm:$0xf0]  ;;  %v1150_v30 = vor.u32 %v1493_v27, %v1149_v25  ;;  %v1151_v32 = vld [vmem:[%s2363_s3 + $0x134] sm:$0xf0]  ;;  %v1546_v33 = vld [vmem:[%s2363_s3 + $0x2dc] sm:$0xf] }
   0x9   :  { %774 = vmatpush.bf16.msra.mxu0 %v1178_v17  ;;  %v1374_v34 = vor.u32 %v1549_v29, %v1373_v28  ;;  %v1375_v35 = vld [vmem:[%s2363_s3 + $0x2f4] sm:$0xf0]  ;;  %v1121_v36 = vld [vmem:[%s2363_s3 + $0xe0] sm:$0xf]  ;;  %v1486_v37 = vld [vmem:[%s2363_s3 + $0xf8] sm:$0xf0]  ;;  %v1154_v38 = vor.u32 %v1490_v31, %v1151_v32 }
   0xa   :  { %787 = vmatpush.bf16.msra.mxu1 %v1402_v21  ;;  %800 = vmatpush.bf16.msra.mxu2 %v1182_v22  ;;  %v1378_v39 = vor.u32 %v1546_v33, %v1375_v35  ;;  %v1345_v40 = vld [vmem:[%s2363_s3 + $0x2a0] sm:$0xf]  ;;  %v1542_v41 = vld [vmem:[%s2363_s3 + $0x2b8] sm:$0xf0]  ;;  %v1483_v42 = vld [vmem:[%s2363_s3 + $0xe4] sm:$0xf]  ;;  %v1122_v46 = vor.u32 %v1486_v37, %v1121_v36 }
   0xb   :  { %813 = vmatpush.bf16.msra.mxu3 %v1406_v26  ;;  %v1123_v43 = vld [vmem:[%s2363_s3 + $0xfc] sm:$0xf0]  ;;  %v1539_v44 = vld [vmem:[%s2363_s3 + $0x2a4] sm:$0xf]  ;;  %v1346_v47 = vor.u32 %v1542_v41, %v1345_v40  ;;  %v1093_v48 = vld [vmem:[%s2363_s3 + $0xa8] sm:$0xf] }
   0xc   :  { %v1347_v45 = vld [vmem:[%s2363_s3 + $0x2bc] sm:$0xf0]  ;;  %v1479_v49 = vld [vmem:[%s2363_s3 + $0xc0] sm:$0xf0]  ;;  %v1126_v50 = vor.u32 %v1483_v42, %v1123_v43  ;;  %v1317_v52 = vld [vmem:[%s2363_s3 + $0x268] sm:$0xf] }
   0xd   :  { %775 = vmatpush.bf16.msra.mxu0 %v1150_v30  ;;  %v1350_v51 = vor.u32 %v1539_v44, %v1347_v45  ;;  %v1535_v53 = vld [vmem:[%s2363_s3 + $0x280] sm:$0xf0]  ;;  %v1476_v54 = vld [vmem:[%s2363_s3 + $0xac] sm:$0xf]  ;;  %v1095_v55 = vld [vmem:[%s2363_s3 + $0xc4] sm:$0xf0]  ;;  %v1094_v58 = vor.u32 %v1479_v49, %v1093_v48 }
   0xe   :  { %788 = vmatpush.bf16.msra.mxu1 %v1374_v34  ;;  %801 = vmatpush.bf16.msra.mxu2 %v1154_v38  ;;  %v1532_v56 = vld [vmem:[%s2363_s3 + $0x26c] sm:$0xf]  ;;  %v1319_v57 = vld [vmem:[%s2363_s3 + $0x284] sm:$0xf0]  ;;  %v1318_v59 = vor.u32 %v1535_v53, %v1317_v52  ;;  %v1065_v60 = vld [vmem:[%s2363_s3 + $0x70] sm:$0xf]  ;;  %v1098_v62 = vor.u32 %v1476_v54, %v1095_v55 }
   0xf   :  { %814 = vmatpush.bf16.msra.mxu3 %v1378_v39  ;;  %v1472_v61 = vld [vmem:[%s2363_s3 + $0x88] sm:$0xf0]  ;;  %v1322_v63 = vor.u32 %v1532_v56, %v1319_v57  ;;  %v1289_v0 = vld [vmem:[%s2363_s3 + $0x230] sm:$0xf]  ;;  %v1469_v2 = vld [vmem:[%s2363_s3 + $0x74] sm:$0xf] }
  0x10   :  { %v1528_v1 = vld [vmem:[%s2363_s3 + $0x248] sm:$0xf0]  ;;  %v1067_v3 = vld [vmem:[%s2363_s3 + $0x8c] sm:$0xf0]  ;;  %v1525_v4 = vld [vmem:[%s2363_s3 + $0x234] sm:$0xf]  ;;  %v1066_v6 = vor.u32 %v1472_v61, %v1065_v60 }
  0x11   :  { %776 = vmatpush.bf16.msra.mxu0 %v1122_v46  ;;  %v1291_v5 = vld [vmem:[%s2363_s3 + $0x24c] sm:$0xf0]  ;;  %v1290_v7 = vor.u32 %v1528_v1, %v1289_v0  ;;  %v1037_v8 = vld [vmem:[%s2363_s3 + $0x38] sm:$0xf]  ;;  %v1465_v9 = vld [vmem:[%s2363_s3 + $0x50] sm:$0xf0]  ;;  %v1070_v10 = vor.u32 %v1469_v2, %v1067_v3 }
  0x12   :  { %789 = vmatpush.bf16.msra.mxu1 %v1346_v47  ;;  %802 = vmatpush.bf16.msra.mxu2 %v1126_v50  ;;  %v1294_v11 = vor.u32 %v1525_v4, %v1291_v5  ;;  %v1261_v12 = vld [vmem:[%s2363_s3 + $0x1f8] sm:$0xf]  ;;  %v1521_v13 = vld [vmem:[%s2363_s3 + $0x210] sm:$0xf0]  ;;  %v1462_v14 = vld [vmem:[%s2363_s3 + $0x3c] sm:$0xf]  ;;  %v1038_v18 = vor.u32 %v1465_v9, %v1037_v8 }
  0x13   :  { %815 = vmatpush.bf16.msra.mxu3 %v1350_v51  ;;  %v1039_v15 = vld [vmem:[%s2363_s3 + $0x54] sm:$0xf0]  ;;  %v1518_v16 = vld [vmem:[%s2363_s3 + $0x1fc] sm:$0xf]  ;;  %v1009_v19 = vld [vmem:[%s2363_s3] sm:$0xf]  ;;  %v1262_v21 = vor.u32 %v1521_v13, %v1261_v12 }
  0x14   :  { %v1263_v17 = vld [vmem:[%s2363_s3 + $0x214] sm:$0xf0]  ;;  %v1458_v20 = vld [vmem:[%s2363_s3 + $0x18] sm:$0xf0]  ;;  %v1233_v22 = vld [vmem:[%s2363_s3 + $0x1c0] sm:$0xf]  ;;  %v1042_v25 = vor.u32 %v1462_v14, %v1039_v15 }
  0x15   :  { %777 = vmatpush.bf16.msra.mxu0 %v1094_v58  ;;  %v1514_v23 = vld [vmem:[%s2363_s3 + $0x1d8] sm:$0xf0]  ;;  %v1455_v24 = vld [vmem:[%s2363_s3 + $0x4] sm:$0xf]  ;;  %v1266_v26 = vor.u32 %v1518_v16, %v1263_v17  ;;  %v1011_v27 = vld [vmem:[%s2363_s3 + $0x1c] sm:$0xf0]  ;;  %v1010_v33 = vor.u32 %v1458_v20, %v1009_v19 }
  0x16   :  { %790 = vmatpush.bf16.msra.mxu1 %v1318_v59  ;;  %803 = vmatpush.bf16.msra.mxu2 %v1098_v62  ;;  %v1213_v28 = vld [vmem:[%s2363_s3 + $0x190] sm:$0xf]  ;;  %v1508_v29 = vld [vmem:[%s2363_s3 + $0x1a8] sm:$0xf0]  ;;  %v1511_v30 = vld [vmem:[%s2363_s3 + $0x1c4] sm:$0xf]  ;;  %v1234_v37 = vor.u32 %v1514_v23, %v1233_v22  ;;  %v1014_v41 = vor.u32 %v1455_v24, %v1011_v27 }
  0x17   :  { %816 = vmatpush.bf16.msra.mxu3 %v1322_v63  ;;  %v1235_v31 = vld [vmem:[%s2363_s3 + $0x1dc] sm:$0xf0]  ;;  %v1437_v32 = vld [vmem:[%s2363_s3 + $0x350] sm:$0xf]  ;;  %v1564_v34 = vld [vmem:[%s2363_s3 + $0x368] sm:$0xf0]  ;;  %v1214_v38 = vor.u32 %v1508_v29, %v1213_v28 }
  0x18   :  { %v1505_v35 = vld [vmem:[%s2363_s3 + $0x194] sm:$0xf]  ;;  %v1215_v36 = vld [vmem:[%s2363_s3 + $0x1ac] sm:$0xf0]  ;;  %v1238_v42 = vor.u32 %v1511_v30, %v1235_v31  ;;  %v1185_v43 = vld [vmem:[%s2363_s3 + $0x158] sm:$0xf]  ;;  %v1438_v45 = vor.u32 %v1564_v34, %v1437_v32 }
  0x19   :  { %778 = vmatpush.bf16.msra.mxu0 %v1066_v6  ;;  %v1561_v39 = vld [vmem:[%s2363_s3 + $0x354] sm:$0xf]  ;;  %v1439_v40 = vld [vmem:[%s2363_s3 + $0x36c] sm:$0xf0]  ;;  %v1218_v46 = vor.u32 %v1505_v35, %v1215_v36  ;;  %v1409_v47 = vld [vmem:[%s2363_s3 + $0x318] sm:$0xf] }
  0x1a   :  { %791 = vmatpush.bf16.msra.mxu1 %v1290_v7  ;;  %804 = vmatpush.bf16.msra.mxu2 %v1070_v10  ;;  %v1501_v44 = vld [vmem:[%s2363_s3 + $0x170] sm:$0xf0] }
  0x1b   :  { %817 = vmatpush.bf16.msra.mxu3 %v1294_v11 }
  0x1d   :  { %779 = vmatpush.bf16.msra.mxu0 %v1038_v18 }
  0x1e   :  { %792 = vmatpush.bf16.msra.mxu1 %v1262_v21  ;;  %805 = vmatpush.bf16.msra.mxu2 %v1042_v25 }
  0x1f   :  { %818 = vmatpush.bf16.msra.mxu3 %v1266_v26 }
  0x20   :  { %10 = vsyncpa [#allocation3], 0  ;;  %v1442_v48 = vor.u32 %v1561_v39, %v1439_v40  ;;  %v1557_v49 = vld [vmem:[%s2363_s3 + $0x330] sm:$0xf0]  ;;  %v1498_v50 = vld [vmem:[%s2363_s3 + $0x15c] sm:$0xf]  ;;  %v1186_v52 = vor.u32 %v1501_v44, %v1185_v43 }
  0x21   :  { %780 = vmatpush.bf16.msra.mxu0 %v1010_v33  ;;  %v1187_v51 = vld [vmem:[%s2363_s3 + $0x174] sm:$0xf0]  ;;  %v1554_v53 = vld [vmem:[%s2363_s3 + $0x31c] sm:$0xf]  ;;  %v1157_v55 = vld [vmem:[%s2363_s3 + $0x120] sm:$0xf]  ;;  %v1410_v57 = vor.u32 %v1557_v49, %v1409_v47 }
  0x22   :  { %793 = vmatpush.bf16.msra.mxu1 %v1234_v37  ;;  %v1411_v54 = vld [vmem:[%s2363_s3 + $0x334] sm:$0xf0]  ;;  %806 = vmatpush.bf16.msra.mxu2 %v1014_v41  ;;  %v1494_v56 = vld [vmem:[%s2363_s3 + $0x138] sm:$0xf0]  ;;  %v1190_v58 = vor.u32 %v1498_v50, %v1187_v51  ;;  %v1381_v59 = vld [vmem:[%s2363_s3 + $0x2e0] sm:$0xf] }
  0x23   :  { %819 = vmatpush.bf16.msra.mxu3 %v1238_v42  ;;  %v1414_v60 = vor.u32 %v1554_v53, %v1411_v54  ;;  %v1550_v61 = vld [vmem:[%s2363_s3 + $0x2f8] sm:$0xf0]  ;;  %v1491_v62 = vld [vmem:[%s2363_s3 + $0x124] sm:$0xf]  ;;  %v1159_v63 = vld [vmem:[%s2363_s3 + $0x13c] sm:$0xf0]  ;;  %v1158_v0 = vor.u32 %v1494_v56, %v1157_v55 }
  0x24   :  { %v1547_v1 = vld [vmem:[%s2363_s3 + $0x2e4] sm:$0xf]  ;;  %v1383_v2 = vld [vmem:[%s2363_s3 + $0x2fc] sm:$0xf0]  ;;  %v1382_v3 = vor.u32 %v1550_v61, %v1381_v59  ;;  %v1162_v4 = vor.u32 %v1491_v62, %v1159_v63  ;;  %v1129_v6 = vld [vmem:[%s2363_s3 + $0xe8] sm:$0xf] }
  0x25   :  { %825 = vmatpush.bf16.msrb.mxu0 %v1214_v38  ;;  %v1386_v5 = vor.u32 %v1547_v1, %v1383_v2  ;;  %v1487_v7 = vld [vmem:[%s2363_s3 + $0x100] sm:$0xf0]  ;;  %v1353_v8 = vld [vmem:[%s2363_s3 + $0x2a8] sm:$0xf]  ;;  %v1484_v11 = vld [vmem:[%s2363_s3 + $0xec] sm:$0xf] }
  0x26   :  { %838 = vmatpush.bf16.msrb.mxu1 %v1438_v45  ;;  %851 = vmatpush.bf16.msrb.mxu2 %v1218_v46  ;;  %v1130_v9 = vor.u32 %v1487_v7, %v1129_v6  ;;  %v1543_v10 = vld [vmem:[%s2363_s3 + $0x2c0] sm:$0xf0]  ;;  %v1131_v12 = vld [vmem:[%s2363_s3 + $0x104] sm:$0xf0]  ;;  %v1540_v15 = vld [vmem:[%s2363_s3 + $0x2ac] sm:$0xf] }
  0x27   :  { %864 = vmatpush.bf16.msrb.mxu3 %v1442_v48  ;;  %v1354_v13 = vor.u32 %v1543_v10, %v1353_v8  ;;  %v1134_v14 = vor.u32 %v1484_v11, %v1131_v12  ;;  %v1355_v16 = vld [vmem:[%s2363_s3 + $0x2c4] sm:$0xf0]  ;;  %v1101_v18 = vld [vmem:[%s2363_s3 + $0xb0] sm:$0xf]  ;;  %v1480_v19 = vld [vmem:[%s2363_s3 + $0xc8] sm:$0xf0] }
  0x28   :  { %v1358_v17 = vor.u32 %v1540_v15, %v1355_v16  ;;  %v1325_v20 = vld [vmem:[%s2363_s3 + $0x270] sm:$0xf]  ;;  %v1102_v21 = vor.u32 %v1480_v19, %v1101_v18  ;;  %v1536_v22 = vld [vmem:[%s2363_s3 + $0x288] sm:$0xf0]  ;;  %v1477_v23 = vld [vmem:[%s2363_s3 + $0xb4] sm:$0xf] }
  0x29   :  { %826 = vmatpush.bf16.msrb.mxu0 %v1186_v52  ;;  %v1103_v24 = vld [vmem:[%s2363_s3 + $0xcc] sm:$0xf0]  ;;  %v1326_v25 = vor.u32 %v1536_v22, %v1325_v20  ;;  %v1533_v27 = vld [vmem:[%s2363_s3 + $0x274] sm:$0xf]  ;;  %v1073_v30 = vld [vmem:[%s2363_s3 + $0x78] sm:$0xf] }
  0x2a   :  { %839 = vmatpush.bf16.msrb.mxu1 %v1410_v57  ;;  %852 = vmatpush.bf16.msrb.mxu2 %v1190_v58  ;;  %v1106_v26 = vor.u32 %v1477_v23, %v1103_v24  ;;  %v1327_v28 = vld [vmem:[%s2363_s3 + $0x28c] sm:$0xf0]  ;;  %v1473_v31 = vld [vmem:[%s2363_s3 + $0x90] sm:$0xf0]  ;;  %v1297_v32 = vld [vmem:[%s2363_s3 + $0x238] sm:$0xf] }
  0x2b   :  { %865 = vmatpush.bf16.msrb.mxu3 %v1414_v60  ;;  %v1330_v29 = vor.u32 %v1533_v27, %v1327_v28  ;;  %v1074_v33 = vor.u32 %v1473_v31, %v1073_v30  ;;  %v1529_v34 = vld [vmem:[%s2363_s3 + $0x250] sm:$0xf0]  ;;  %v1470_v35 = vld [vmem:[%s2363_s3 + $0x7c] sm:$0xf]  ;;  %v1075_v36 = vld [vmem:[%s2363_s3 + $0x94] sm:$0xf0] }
  0x2c   :  { %v1298_v37 = vor.u32 %v1529_v34, %v1297_v32  ;;  %v1078_v38 = vor.u32 %v1470_v35, %v1075_v36  ;;  %v1526_v39 = vld [vmem:[%s2363_s3 + $0x23c] sm:$0xf]  ;;  %v1299_v40 = vld [vmem:[%s2363_s3 + $0x254] sm:$0xf0]  ;;  %v1045_v42 = vld [vmem:[%s2363_s3 + $0x40] sm:$0xf] }
  0x2d   :  { %827 = vmatpush.bf16.msrb.mxu0 %v1158_v0  ;;  %v1302_v41 = vor.u32 %v1526_v39, %v1299_v40  ;;  %v1466_v43 = vld [vmem:[%s2363_s3 + $0x58] sm:$0xf0]  ;;  %v1269_v44 = vld [vmem:[%s2363_s3 + $0x200] sm:$0xf]  ;;  %v1463_v47 = vld [vmem:[%s2363_s3 + $0x44] sm:$0xf] }
  0x2e   :  { %840 = vmatpush.bf16.msrb.mxu1 %v1382_v3  ;;  %853 = vmatpush.bf16.msrb.mxu2 %v1162_v4  ;;  %v1046_v45 = vor.u32 %v1466_v43, %v1045_v42  ;;  %v1522_v46 = vld [vmem:[%s2363_s3 + $0x218] sm:$0xf0]  ;;  %v1047_v48 = vld [vmem:[%s2363_s3 + $0x5c] sm:$0xf0]  ;;  %v1519_v51 = vld [vmem:[%s2363_s3 + $0x204] sm:$0xf] }
  0x2f   :  { %866 = vmatpush.bf16.msrb.mxu3 %v1386_v5  ;;  %v1270_v49 = vor.u32 %v1522_v46, %v1269_v44  ;;  %v1050_v50 = vor.u32 %v1463_v47, %v1047_v48  ;;  %v1271_v52 = vld [vmem:[%s2363_s3 + $0x21c] sm:$0xf0]  ;;  %v1017_v54 = vld [vmem:[%s2363_s3 + $0x8] sm:$0xf]  ;;  %v1459_v55 = vld [vmem:[%s2363_s3 + $0x20] sm:$0xf0] }
  0x30   :  { %v1274_v53 = vor.u32 %v1519_v51, %v1271_v52  ;;  %v1241_v56 = vld [vmem:[%s2363_s3 + $0x1c8] sm:$0xf]  ;;  %v1018_v57 = vor.u32 %v1459_v55, %v1017_v54  ;;  %v1515_v58 = vld [vmem:[%s2363_s3 + $0x1e0] sm:$0xf0]  ;;  %v1456_v59 = vld [vmem:[%s2363_s3 + $0xc] sm:$0xf] }
  0x31   :  { %828 = vmatpush.bf16.msrb.mxu0 %v1130_v9  ;;  %v1019_v60 = vld [vmem:[%s2363_s3 + $0x24] sm:$0xf0]  ;;  %v1242_v61 = vor.u32 %v1515_v58, %v1241_v56  ;;  %v1512_v63 = vld [vmem:[%s2363_s3 + $0x1cc] sm:$0xf]  ;;  %v22_v2 = vld [vmem:[%s2361_s1] sm:$0x3] }
  0x32   :  { %841 = vmatpush.bf16.msrb.mxu1 %v1354_v13  ;;  %854 = vmatpush.bf16.msrb.mxu2 %v1134_v14  ;;  %v1022_v62 = vor.u32 %v1456_v59, %v1019_v60  ;;  %v1243_v0 = vld [vmem:[%s2363_s3 + $0x1e4] sm:$0xf0]  ;;  %v35_v3 = vld [vmem:[%s2362_s2] sm:$0x3]  ;;  %v29_v4 = vperm.slane %v22_v2, 0  ;;  %v30_v5 = vperm.slane %v22_v2, 1 }
  0x33   :  { %867 = vmatpush.bf16.msrb.mxu3 %v1358_v17  ;;  %v1246_v1 = vor.u32 %v1512_v63, %v1243_v0  ;;  %v37_v6 = vperm.slane %v35_v3, 0  ;;  %v38_v7 = vperm.slane %v35_v3, 1  ;;  %v1221_v16 = vld [vmem:[%s2363_s3 + $0x198] sm:$0xf]  ;;  %v1509_v17 = vld [vmem:[%s2363_s3 + $0x1b0] sm:$0xf0] }
  0x34   :  { %v1445_v20 = vld [vmem:[%s2363_s3 + $0x358] sm:$0xf]  ;;  %v1506_v23 = vld [vmem:[%s2363_s3 + $0x19c] sm:$0xf]  ;;  %v1222_v30 = vor.u32 %v1509_v17, %v1221_v16  ;;  %v1193_v32 = vld [vmem:[%s2363_s3 + $0x160] sm:$0xf] }
  0x35   :  { %829 = vmatpush.bf16.msrb.mxu0 %v1102_v21  ;;  %v1565_v21 = vld [vmem:[%s2363_s3 + $0x370] sm:$0xf0]  ;;  %v1223_v24 = vld [vmem:[%s2363_s3 + $0x1b4] sm:$0xf0]  ;;  %v1499_v39 = vld [vmem:[%s2363_s3 + $0x164] sm:$0xf] }
  0x36   :  { %842 = vmatpush.bf16.msrb.mxu1 %v1326_v25  ;;  %855 = vmatpush.bf16.msrb.mxu2 %v1106_v26  ;;  %v1562_v26 = vld [vmem:[%s2363_s3 + $0x35c] sm:$0xf]  ;;  %v1447_v27 = vld [vmem:[%s2363_s3 + $0x374] sm:$0xf0]  ;;  %v1446_v31 = vor.u32 %v1565_v21, %v1445_v20  ;;  %v1226_v35 = vor.u32 %v1506_v23, %v1223_v24  ;;  %v1195_v40 = vld [vmem:[%s2363_s3 + $0x17c] sm:$0xf0] }
  0x37   :  { %868 = vmatpush.bf16.msrb.mxu3 %v1330_v29  ;;  %v1450_v36 = vor.u32 %v1562_v26, %v1447_v27  ;;  %v1419_v42 = vld [vmem:[%s2363_s3 + $0x33c] sm:$0xf0]  ;;  %v1495_v46 = vld [vmem:[%s2363_s3 + $0x140] sm:$0xf0]  ;;  %v1198_v47 = vor.u32 %v1499_v39, %v1195_v40  ;;  %v1492_v51 = vld [vmem:[%s2363_s3 + $0x12c] sm:$0xf] }
  0x38   :  { %v1167_v52 = vld [vmem:[%s2363_s3 + $0x144] sm:$0xf0]  ;;  %v1488_v58 = vld [vmem:[%s2363_s3 + $0x108] sm:$0xf0]  ;;  %v1485_v63 = vld [vmem:[%s2363_s3 + $0xf4] sm:$0xf] }
  0x39   :  { %830 = vmatpush.bf16.msrb.mxu0 %v1074_v33  ;;  %v1502_v33 = vld [vmem:[%s2363_s3 + $0x178] sm:$0xf0]  ;;  %v1391_v54 = vld [vmem:[%s2363_s3 + $0x304] sm:$0xf0]  ;;  %v1170_v59 = vor.u32 %v1492_v51, %v1167_v52  ;;  %v1139_v0 = vld [vmem:[%s2363_s3 + $0x10c] sm:$0xf0] }
  0x3a   :  { %843 = vmatpush.bf16.msrb.mxu1 %v1298_v37  ;;  %856 = vmatpush.bf16.msrb.mxu2 %v1078_v38  ;;  %v1417_v37 = vld [vmem:[%s2363_s3 + $0x320] sm:$0xf]  ;;  %v1558_v38 = vld [vmem:[%s2363_s3 + $0x338] sm:$0xf0]  ;;  %v1194_v43 = vor.u32 %v1502_v33, %v1193_v32  ;;  %v1363_v2 = vld [vmem:[%s2363_s3 + $0x2cc] sm:$0xf0] }
  0x3b   :  { %869 = vmatpush.bf16.msrb.mxu3 %v1302_v41  ;;  %v1555_v41 = vld [vmem:[%s2363_s3 + $0x324] sm:$0xf]  ;;  %v1418_v44 = vor.u32 %v1558_v38, %v1417_v37  ;;  %v1081_v17 = vld [vmem:[%s2363_s3 + $0x80] sm:$0xf]  ;;  %v1464_v37 = vld [vmem:[%s2363_s3 + $0x4c] sm:$0xf] }
  0x3c   :  { %v1422_v48 = vor.u32 %v1555_v41, %v1419_v42  ;;  %v1305_v21 = vld [vmem:[%s2363_s3 + $0x240] sm:$0xf]  ;;  %v1471_v23 = vld [vmem:[%s2363_s3 + $0x84] sm:$0xf]  ;;  %v1055_v38 = vld [vmem:[%s2363_s3 + $0x64] sm:$0xf0] }
  0x3d   :  { %831 = vmatpush.bf16.msrb.mxu0 %v1046_v45  ;;  %v1165_v45 = vld [vmem:[%s2363_s3 + $0x128] sm:$0xf]  ;;  %v1083_v24 = vld [vmem:[%s2363_s3 + $0x9c] sm:$0xf0]  ;;  %v1520_v39 = vld [vmem:[%s2363_s3 + $0x20c] sm:$0xf] }
  0x3e   :  { %844 = vmatpush.bf16.msrb.mxu1 %v1270_v49  ;;  %857 = vmatpush.bf16.msrb.mxu2 %v1050_v50  ;;  %v1389_v49 = vld [vmem:[%s2363_s3 + $0x2e8] sm:$0xf]  ;;  %v1551_v50 = vld [vmem:[%s2363_s3 + $0x300] sm:$0xf0]  ;;  %v1166_v55 = vor.u32 %v1495_v46, %v1165_v45  ;;  %v1307_v26 = vld [vmem:[%s2363_s3 + $0x25c] sm:$0xf0]  ;;  %v1086_v32 = vor.u32 %v1471_v23, %v1083_v24  ;;  %v1058_v46 = vor.u32 %v1464_v37, %v1055_v38 }
  0x3f   :  { %870 = vmatpush.bf16.msrb.mxu3 %v1274_v53  ;;  %v1548_v53 = vld [vmem:[%s2363_s3 + $0x2ec] sm:$0xf]  ;;  %v1390_v56 = vor.u32 %v1551_v50, %v1389_v49  ;;  %v1279_v40 = vld [vmem:[%s2363_s3 + $0x224] sm:$0xf0]  ;;  %v1249_v45 = vld [vmem:[%s2363_s3 + $0x1d0] sm:$0xf] }
  0x40   :  { %v1394_v60 = vor.u32 %v1548_v53, %v1391_v54  ;;  %v1457_v49 = vld [vmem:[%s2363_s3 + $0x14] sm:$0xf]  ;;  %v1027_v50 = vld [vmem:[%s2363_s3 + $0x2c] sm:$0xf0]  ;;  %v1229_v53 = vld [vmem:[%s2363_s3 + $0x1a0] sm:$0xf] }
  0x41   :  { %832 = vmatpush.bf16.msrb.mxu0 %v1018_v57  ;;  %v1137_v57 = vld [vmem:[%s2363_s3 + $0xf0] sm:$0xf]  ;;  %v1513_v51 = vld [vmem:[%s2363_s3 + $0x1d4] sm:$0xf]  ;;  %v1510_v54 = vld [vmem:[%s2363_s3 + $0x1b8] sm:$0xf0] }
  0x42   :  { %845 = vmatpush.bf16.msrb.mxu1 %v1242_v61  ;;  %858 = vmatpush.bf16.msrb.mxu2 %v1022_v62  ;;  %v1361_v61 = vld [vmem:[%s2363_s3 + $0x2b0] sm:$0xf]  ;;  %v1544_v62 = vld [vmem:[%s2363_s3 + $0x2c8] sm:$0xf0]  ;;  %v1138_v3 = vor.u32 %v1488_v58, %v1137_v57  ;;  %v1089_v23 = vld [vmem:[%s2363_s3 + $0x88] sm:$0xf] }
  0x43   :  { %871 = vmatpush.bf16.msrb.mxu3 %v1246_v1  ;;  %v1541_v1 = vld [vmem:[%s2363_s3 + $0x2b4] sm:$0xf]  ;;  %v1251_v52 = vld [vmem:[%s2363_s3 + $0x1ec] sm:$0xf0]  ;;  %v1475_v24 = vld [vmem:[%s2363_s3 + $0xa0] sm:$0xf0] }
  0x44   :  { %v1033_v37 = vld [vmem:[%s2363_s3 + $0x18] sm:$0xf]  ;;  %v1461_v38 = vld [vmem:[%s2363_s3 + $0x30] sm:$0xf0]  ;;  %s998_s20 = sshll.u32 %s2365_s5, 4  ;;  %vm989_vm0 = vcmask 130048   ;;  %s999_s20 = int_to_ptr.hbm [resolvable:$true] %s998_s20 }
  0x74   :  { %v26_v8 = vpop.permute.xlu0 %25 }
  0x75   :  { %v33_v9 = vmul.f32 %v29_v4, %v26_v8  ;;  %v34_v10 = vmul.f32 %v30_v5, %v26_v8  ;;  %v1362_v4 = vor.u32 %v1544_v62, %v1361_v61  ;;  %v1109_v5 = vld [vmem:[%s2363_s3 + $0xb8] sm:$0xf]  ;;  %v1366_v8 = vor.u32 %v1541_v1, %v1363_v2  ;;  %v1425_v1 = vld [vmem:[%s2363_s3 + $0x328] sm:$0xf]  ;;  %v1559_v2 = vld [vmem:[%s2363_s3 + $0x340] sm:$0xf0] }
  0x76   :  { %v1230_v61 = vor.u32 %v1510_v54, %v1229_v53 }
  0x77   :  { %v41_v11 = vadd.f32 %v37_v6, %v33_v9  ;;  %v42_v12 = vadd.f32 %v38_v7, %v34_v10  ;;  %v1481_v6 = vld [vmem:[%s2363_s3 + $0xd0] sm:$0xf0]  ;;  %v1142_v7 = vor.u32 %v1485_v63, %v1139_v0  ;;  %v1333_v9 = vld [vmem:[%s2363_s3 + $0x278] sm:$0xf]  ;;  %v1201_v63 = vld [vmem:[%s2363_s3 + $0x168] sm:$0xf] }
  0x78   :  { %v1537_v10 = vld [vmem:[%s2363_s3 + $0x290] sm:$0xf0]  ;;  %v1503_v0 = vld [vmem:[%s2363_s3 + $0x180] sm:$0xf0] }
  0x79   :  { %v43_v13 = vmul.f32 0.5, %v41_v11  ;;  %v44_v14 = vmul.f32 0.5, %v42_v12  ;;  %v1478_v11 = vld [vmem:[%s2363_s3 + $0xbc] sm:$0xf]  ;;  %v1111_v12 = vld [vmem:[%s2363_s3 + $0xd4] sm:$0xf0]  ;;  %v1334_v16 = vor.u32 %v1537_v10, %v1333_v9 }
  0x7b   :  { %1570 = vtanh.f32 %v43_v13  ;;  %v1534_v13 = vld [vmem:[%s2363_s3 + $0x27c] sm:$0xf] }
  0x7c   :  { %1572 = vtanh.f32 %v44_v14  ;;  %v1335_v14 = vld [vmem:[%s2363_s3 + $0x294] sm:$0xf0] }
  0x7d   :  { %v1338_v20 = vor.u32 %v1534_v13, %v1335_v14  ;;  %v1369_v13 = vld [vmem:[%s2363_s3 + $0x2b8] sm:$0xf]  ;;  %v1545_v14 = vld [vmem:[%s2363_s3 + $0x2d0] sm:$0xf0] }
  0x81   :  { %v1571_v15 = vpop.eup %1570 }
  0x82   :  { %v1573_v18 = vpop.eup %1572  ;;  %v47_v19 = vmul.f32 0.5, %v1571_v15  ;;  %v1110_v15 = vor.u32 %v1481_v6, %v1109_v5  ;;  %v1173_v5 = vld [vmem:[%s2363_s3 + $0x130] sm:$0xf]  ;;  %v1496_v6 = vld [vmem:[%s2363_s3 + $0x148] sm:$0xf0] }
  0x83   :  { %v48_v22 = vmul.f32 0.5, %v1573_v18  ;;  %v1474_v18 = vld [vmem:[%s2363_s3 + $0x98] sm:$0xf0]  ;;  %v1174_v9 = vor.u32 %v1496_v6, %v1173_v5 }
  0x84   :  { %v49_v25 = vadd.f32 0.5, %v47_v19  ;;  %v1114_v19 = vor.u32 %v1478_v11, %v1111_v12  ;;  %v1082_v27 = vor.u32 %v1474_v18, %v1081_v17  ;;  %v1145_v11 = vld [vmem:[%s2363_s3 + $0xf8] sm:$0xf]  ;;  %v1489_v12 = vld [vmem:[%s2363_s3 + $0x110] sm:$0xf0] }
  0x85   :  { %v50_v28 = vadd.f32 0.5, %v48_v22  ;;  %v1530_v22 = vld [vmem:[%s2363_s3 + $0x258] sm:$0xf0]  ;;  %v1117_v17 = vld [vmem:[%s2363_s3 + $0xc0] sm:$0xf] }
  0x86   :  { %v2063_v29 = vpack.c.bf16 %v49_v25, %v49_v25  ;;  %v1527_v25 = vld [vmem:[%s2363_s3 + $0x244] sm:$0xf]  ;;  %v1482_v18 = vld [vmem:[%s2363_s3 + $0xd8] sm:$0xf0] }
  0x87   :  { %v2071_v34 = vpack.c.bf16 %v50_v28, %v50_v28  ;;  %v1306_v28 = vor.u32 %v1530_v22, %v1305_v21  ;;  %v1310_v33 = vor.u32 %v1527_v25, %v1307_v26  ;;  %v1118_v21 = vor.u32 %v1482_v18, %v1117_v17  ;;  %v1313_v25 = vld [vmem:[%s2363_s3 + $0x248] sm:$0xf]  ;;  %v1531_v26 = vld [vmem:[%s2363_s3 + $0x260] sm:$0xf0] }
  0x88   :  { %781 = vmatmul.bf16.vlgmr.msra.gmra.mxu0 %v2063_v29  ;;  %807 = vmatmul.bf16.vlgmr.msra.gmra.mxu2 %v2063_v29 }
  0x89   :  { %794 = vmatmul.bf16.vlgmr.msra.gmra.mxu1 %v2071_v34  ;;  %820 = vmatmul.bf16.vlgmr.msra.gmra.mxu3 %v2071_v34 }
  0x8a   :  { %877 = vmatpush.bf16.msra.mxu0 %v1222_v30  ;;  %890 = vmatpush.bf16.msra.mxu1 %v1446_v31  ;;  %v1053_v30 = vld [vmem:[%s2363_s3 + $0x48] sm:$0xf]  ;;  %v1467_v31 = vld [vmem:[%s2363_s3 + $0x60] sm:$0xf0] }
  0x8b   :  { %903 = vmatpush.bf16.msra.mxu2 %v1226_v35  ;;  %916 = vmatpush.bf16.msra.mxu3 %v1450_v36  ;;  %v1277_v35 = vld [vmem:[%s2363_s3 + $0x208] sm:$0xf]  ;;  %v1523_v36 = vld [vmem:[%s2363_s3 + $0x220] sm:$0xf0]  ;;  %v1054_v41 = vor.u32 %v1467_v31, %v1053_v30  ;;  %v1061_v30 = vld [vmem:[%s2363_s3 + $0x50] sm:$0xf] }
  0x8c   :  { %v1278_v42 = vor.u32 %v1523_v36, %v1277_v35  ;;  %v1468_v31 = vld [vmem:[%s2363_s3 + $0x68] sm:$0xf0] }
  0x8d   :  { %v1062_v35 = vor.u32 %v1468_v31, %v1061_v30 }
  0x8e   :  { %878 = vmatpush.bf16.msra.mxu0 %v1194_v43  ;;  %891 = vmatpush.bf16.msra.mxu1 %v1418_v44  ;;  %v1025_v43 = vld [vmem:[%s2363_s3 + $0x10] sm:$0xf]  ;;  %v1460_v44 = vld [vmem:[%s2363_s3 + $0x28] sm:$0xf0] }
  0x8f   :  { %904 = vmatpush.bf16.msra.mxu2 %v1198_v47  ;;  %917 = vmatpush.bf16.msra.mxu3 %v1422_v48  ;;  %v1282_v47 = vor.u32 %v1520_v39, %v1279_v40  ;;  %v1516_v48 = vld [vmem:[%s2363_s3 + $0x1e8] sm:$0xf0]  ;;  %v1026_v57 = vor.u32 %v1460_v44, %v1025_v43  ;;  %v1257_v39 = vld [vmem:[%s2363_s3 + $0x1d8] sm:$0xf]  ;;  %v1517_v40 = vld [vmem:[%s2363_s3 + $0x1f0] sm:$0xf0] }
  0x90   :  { %v1250_v58 = vor.u32 %v1516_v48, %v1249_v45  ;;  %v2348_v43 = vld [vmem:[%s2364_s4] sm:$0x7f] }
  0x91   :  { %v183_v44 = vperm.slane %v2348_v43, 0  ;;  %v187_v17 = vperm.slane %v2348_v43, 4 }
  0x92   :  { %879 = vmatpush.bf16.msra.mxu0 %v1166_v55  ;;  %892 = vmatpush.bf16.msra.mxu1 %v1390_v56  ;;  %v1453_v55 = vld [vmem:[%s2363_s3 + $0x360] sm:$0xf]  ;;  %v1566_v56 = vld [vmem:[%s2363_s3 + $0x378] sm:$0xf0] }
  0x93   :  { %905 = vmatpush.bf16.msra.mxu2 %v1170_v59  ;;  %918 = vmatpush.bf16.msra.mxu3 %v1394_v60  ;;  %v1030_v59 = vor.u32 %v1457_v49, %v1027_v50  ;;  %v1254_v60 = vor.u32 %v1513_v51, %v1251_v52  ;;  %v1454_v62 = vor.u32 %v1566_v56, %v1453_v55  ;;  %v184_v49 = vperm.slane %v2348_v43, 1 }
  0x96   :  { %880 = vmatpush.bf16.msra.mxu0 %v1138_v3  ;;  %893 = vmatpush.bf16.msra.mxu1 %v1362_v4  ;;  %v1202_v3 = vor.u32 %v1503_v0, %v1201_v63  ;;  %v1426_v4 = vor.u32 %v1559_v2, %v1425_v1 }
  0x97   :  { %906 = vmatpush.bf16.msra.mxu2 %v1142_v7  ;;  %919 = vmatpush.bf16.msra.mxu3 %v1366_v8  ;;  %v1397_v7 = vld [vmem:[%s2363_s3 + $0x2f0] sm:$0xf]  ;;  %v1552_v8 = vld [vmem:[%s2363_s3 + $0x308] sm:$0xf0] }
  0x98   :  { %833 = vmatmul.bf16.vlgmr.msrb.gmra.mxu0 %v2063_v29  ;;  %859 = vmatmul.bf16.vlgmr.msrb.gmra.mxu2 %v2063_v29  ;;  %v1398_v10 = vor.u32 %v1552_v8, %v1397_v7 }
  0x99   :  { %846 = vmatmul.bf16.vlgmr.msrb.gmra.mxu1 %v2071_v34  ;;  %872 = vmatmul.bf16.vlgmr.msrb.gmra.mxu3 %v2071_v34 }
  0x9a   :  { %881 = vmatpush.bf16.msra.mxu0 %v1110_v15  ;;  %894 = vmatpush.bf16.msra.mxu1 %v1334_v16  ;;  %v1146_v15 = vor.u32 %v1489_v12, %v1145_v11  ;;  %v1370_v16 = vor.u32 %v1545_v14, %v1369_v13 }
  0x9b   :  { %907 = vmatpush.bf16.msra.mxu2 %v1114_v19  ;;  %920 = vmatpush.bf16.msra.mxu3 %v1338_v20  ;;  %v1341_v19 = vld [vmem:[%s2363_s3 + $0x280] sm:$0xf]  ;;  %v1538_v20 = vld [vmem:[%s2363_s3 + $0x298] sm:$0xf0] }
  0x9c   :  { %v1342_v22 = vor.u32 %v1538_v20, %v1341_v19 }
  0x9e   :  { %882 = vmatpush.bf16.msra.mxu0 %v1082_v27  ;;  %895 = vmatpush.bf16.msra.mxu1 %v1306_v28  ;;  %v1090_v27 = vor.u32 %v1475_v24, %v1089_v23  ;;  %v1314_v28 = vor.u32 %v1531_v26, %v1313_v25  ;;  %v188_v26 = vperm.slane %v2348_v43, 5 }
  0x9f   :  { %908 = vmatpush.bf16.msra.mxu2 %v1086_v32  ;;  %921 = vmatpush.bf16.msra.mxu3 %v1310_v33  ;;  %v1285_v32 = vld [vmem:[%s2363_s3 + $0x210] sm:$0xf]  ;;  %v1524_v33 = vld [vmem:[%s2363_s3 + $0x228] sm:$0xf0]  ;;  %s1615_s3 = smov [#allocation2]  }
  0xa0   :  { %v1286_v36 = vor.u32 %v1524_v33, %v1285_v32  ;;  %s996_s4 = sshll.u32 %s1615_s3, 4  ;;  %s997_s4 = int_to_ptr.vmem [resolvable:$true] %s996_s4 }
  0xa2   :  { %883 = vmatpush.bf16.msra.mxu0 %v1054_v41  ;;  %896 = vmatpush.bf16.msra.mxu1 %v1278_v42  ;;  %v1034_v41 = vor.u32 %v1461_v38, %v1033_v37  ;;  %v1258_v42 = vor.u32 %v1517_v40, %v1257_v39 }
  0xa3   :  { %909 = vmatpush.bf16.msra.mxu2 %v1058_v46  ;;  %922 = vmatpush.bf16.msra.mxu3 %v1282_v47 }
  0xa6   :  { %884 = vmatpush.bf16.msra.mxu0 %v1026_v57  ;;  %897 = vmatpush.bf16.msra.mxu1 %v1250_v58  ;;  %v185_v57 = vperm.slane %v2348_v43, 2 }
  0xa7   :  { %910 = vmatpush.bf16.msra.mxu2 %v1030_v59  ;;  %923 = vmatpush.bf16.msra.mxu3 %v1254_v60 }
  0xa9   :  { %885 = vmatmul.bf16.vlgmr.msra.gmra.mxu0 %v2063_v29  ;;  %898 = vmatmul.bf16.vlgmr.msra.gmra.mxu1 %v2071_v34 }
  0xaa   :  { %929 = vmatpush.bf16.msrb.mxu0 %v1230_v61  ;;  %942 = vmatpush.bf16.msrb.mxu1 %v1454_v62 }
  0xab   :  { %911 = vmatmul.bf16.vlgmr.msra.gmra.mxu2 %v2063_v29  ;;  %924 = vmatmul.bf16.vlgmr.msra.gmra.mxu3 %v2071_v34 }
  0xae   :  { %930 = vmatpush.bf16.msrb.mxu0 %v1202_v3  ;;  %943 = vmatpush.bf16.msrb.mxu1 %v1426_v4  ;;  %v186_v3 = vperm.slane %v2348_v43, 3 }
  0xb2   :  { %931 = vmatpush.bf16.msrb.mxu0 %v1174_v9  ;;  %944 = vmatpush.bf16.msrb.mxu1 %v1398_v10 }
  0xb6   :  { %932 = vmatpush.bf16.msrb.mxu0 %v1146_v15  ;;  %945 = vmatpush.bf16.msrb.mxu1 %v1370_v16 }
  0xba   :  { %933 = vmatpush.bf16.msrb.mxu0 %v1118_v21  ;;  %946 = vmatpush.bf16.msrb.mxu1 %v1342_v22 }
  0xbe   :  { %934 = vmatpush.bf16.msrb.mxu0 %v1090_v27  ;;  %947 = vmatpush.bf16.msrb.mxu1 %v1314_v28 }
  0xc2   :  { %935 = vmatpush.bf16.msrb.mxu0 %v1062_v35  ;;  %948 = vmatpush.bf16.msrb.mxu1 %v1286_v36 }
  0xc6   :  { %936 = vmatpush.bf16.msrb.mxu0 %v1034_v41  ;;  %949 = vmatpush.bf16.msrb.mxu1 %v1258_v42 }
  0xc9   :  { %937 = vmatmul.bf16.vlgmr.msrb.gmra.mxu0 %v2063_v29  ;;  %950 = vmatmul.bf16.vlgmr.msrb.gmra.mxu1 %v2071_v34 }
 0x105   :  { %v782_v45 = vpop.f32.mrf.mxu0 }
 0x106   :  { %v783_v46 = vadd.f32 %v782_v45, %v183_v44  ;;  %v795_v47 = vpop.f32.mrf.mxu1 }
 0x108   :  { %v796_v48 = vadd.f32 %v795_v47, %v783_v46  ;;  %v189_v47 = vperm.slane %v2348_v43, 6 }
 0x10a   :  { %v955_v50 = vmul.f32 0.5, %v796_v48 }
 0x10b   :  { %v808_v51 = vpop.f32.mrf.mxu2 }
 0x10c   :  { %1574 = vtanh.f32 %v955_v50  ;;  %v809_v52 = vadd.f32 %v808_v51, %v184_v49  ;;  %v821_v29 = vpop.f32.mrf.mxu3 }
 0x10d   :  { %v784_v53 = vpop.f32.mrf.mxu0 }
 0x10e   :  { %v822_v34 = vadd.f32 %v821_v29, %v809_v52  ;;  %v797_v54 = vpop.f32.mrf.mxu1 }
 0x110   :  { %v956_v55 = vmul.f32 0.5, %v822_v34 }
 0x112   :  { %v1575_v56 = vpop.eup %1574  ;;  %1576 = vtanh.f32 %v956_v55 }
 0x113   :  { %v969_v58 = vmul.f32 0.5, %v1575_v56  ;;  %v810_v59 = vpop.f32.mrf.mxu2 }
 0x114   :  { %v823_v60 = vpop.f32.mrf.mxu3 }
 0x115   :  { %v976_v61 = vadd.f32 0.5, %v969_v58  ;;  %v834_v62 = vpop.f32.mrf.mxu0 }
 0x116   :  { %v835_v63 = vadd.f32 %v834_v62, %v185_v57  ;;  %v847_v0 = vpop.f32.mrf.mxu1 }
 0x117   :  { %983 = vst [vmem:[#allocation2] sm:$0xff] %v976_v61 }
 0x118   :  { %v1577_v1 = vpop.eup %1576  ;;  %v848_v2 = vadd.f32 %v847_v0, %v835_v63 }
 0x119   :  { %v970_v4 = vmul.f32 0.5, %v1577_v1 }
 0x11a   :  { %v957_v5 = vmul.f32 0.5, %v848_v2 }
 0x11b   :  { %v977_v6 = vadd.f32 0.5, %v970_v4  ;;  %v860_v7 = vpop.f32.mrf.mxu2 }
 0x11c   :  { %1578 = vtanh.f32 %v957_v5  ;;  %v861_v8 = vadd.f32 %v860_v7, %v186_v3  ;;  %v873_v9 = vpop.f32.mrf.mxu3 }
 0x11d   :  { %984 = vst [vmem:[#allocation2 + $0x8] sm:$0xff] %v977_v6  ;;  %v836_v10 = vpop.f32.mrf.mxu0 }
 0x11e   :  { %v874_v11 = vadd.f32 %v873_v9, %v861_v8  ;;  %v849_v12 = vpop.f32.mrf.mxu1 }
 0x120   :  { %v958_v13 = vmul.f32 0.5, %v874_v11 }
 0x122   :  { %v1579_v14 = vpop.eup %1578  ;;  %1580 = vtanh.f32 %v958_v13 }
 0x123   :  { %v971_v15 = vmul.f32 0.5, %v1579_v14  ;;  %v862_v16 = vpop.f32.mrf.mxu2 }
 0x124   :  { %v875_v18 = vpop.f32.mrf.mxu3 }
 0x125   :  { %v978_v19 = vadd.f32 0.5, %v971_v15 }
 0x126   :  { %v886_v20 = vpop.f32.mrf.mxu0  ;;  %v899_v21 = vpop.f32.mrf.mxu1 }
 0x127   :  { %985 = vst [vmem:[#allocation2 + $0x10] sm:$0xff] %v978_v19  ;;  %v887_v22 = vadd.f32 %v886_v20, %v187_v17 }
 0x128   :  { %v1581_v23 = vpop.eup %1580 }
 0x129   :  { %v972_v24 = vmul.f32 0.5, %v1581_v23  ;;  %v900_v25 = vadd.f32 %v899_v21, %v887_v22 }
 0x12b   :  { %v979_v27 = vadd.f32 0.5, %v972_v24  ;;  %v959_v28 = vmul.f32 0.5, %v900_v25 }
 0x12d   :  { %986 = vst [vmem:[#allocation2 + $0x18] sm:$0xff] %v979_v27  ;;  %1582 = vtanh.f32 %v959_v28 }
 0x12e   :  { %v912_v30 = vpop.f32.mrf.mxu2  ;;  %v925_v31 = vpop.f32.mrf.mxu3 }
 0x12f   :  { %v913_v32 = vadd.f32 %v912_v30, %v188_v26  ;;  %v888_v33 = vpop.f32.mrf.mxu0  ;;  %v901_v35 = vpop.f32.mrf.mxu1 }
 0x131   :  { %v926_v36 = vadd.f32 %v925_v31, %v913_v32 }
 0x133   :  { %v960_v37 = vmul.f32 0.5, %v926_v36  ;;  %v1583_v38 = vpop.eup %1582 }
 0x134   :  { %v973_v39 = vmul.f32 0.5, %v1583_v38 }
 0x135   :  { %1584 = vtanh.f32 %v960_v37 }
 0x136   :  { %v914_v40 = vpop.f32.mrf.mxu2  ;;  %v927_v41 = vpop.f32.mrf.mxu3  ;;  %v980_v42 = vadd.f32 0.5, %v973_v39 }
 0x138   :  { %987 = vst [vmem:[#allocation2 + $0x20] sm:$0xff] %v980_v42 }
 0x13b   :  { %v1585_v44 = vpop.eup %1584 }
 0x13c   :  { %v974_v45 = vmul.f32 0.5, %v1585_v44 }
 0x13e   :  { %v981_v46 = vadd.f32 0.5, %v974_v45 }
 0x140   :  { %988 = vst [vmem:[#allocation2 + $0x28] sm:$0xff] %v981_v46 }
 0x146   :  { %v938_v48 = vpop.f32.mrf.mxu0  ;;  %v951_v49 = vpop.f32.mrf.mxu1 }
 0x147   :  { %v939_v50 = vadd.f32 %v938_v48, %v189_v47 }
 0x149   :  { %v952_v51 = vadd.f32 %v951_v49, %v939_v50 }
 0x14b   :  { %v961_v52 = vmul.f32 0.5, %v952_v51 }
 0x14d   :  { %1586 = vtanh.f32 %v961_v52 }
 0x14e   :  { %v940_v29 = vpop.f32.mrf.mxu0  ;;  %v953_v53 = vpop.f32.mrf.mxu1 }
 0x153   :  { %v1587_v34 = vpop.eup %1586 }
 0x154   :  { %v975_v54 = vmul.f32 0.5, %v1587_v34 }
 0x156   :  { %v982_v55 = vadd.f32 0.5, %v975_v54 }
 0x158   :  { %990 = vst.msk [vmem:[#allocation2 + $0x30] sm:$0xff] %vm989_vm0, %v982_v55 }
 0x159   :  { %1001 = dma.vmem_to_hbm [thread:$0]  %s997_s4, 896, %s999_s20, [#allocation3]  }
 0x15a   :  { %1612 = dma.done.wait [#allocation3], 896  }
 0x15b   :  { %1613 = vsyncadd [#allocation3], 4294966400 }
 0x15c   :  { %1006 = vsyncpa [#allocation3], 1 }

</bundles_post_ra>
